<compile_context>
chip_gen: v7x
topology: tpu7x:2x2x1
jax: 0.10.0
libtpu: 0.0.40
codegen_flags: <defaults>
</compile_context>

<pallas_src>
import functools

import jax
import jax.numpy as jnp
from jax import lax
from jax.experimental import pallas as pl
from jax.experimental.pallas import tpu as pltpu


# --------------------------------- kernel ----------------------------------

def local_features_kernel(x_ref, w0_ref, b0_ref, wb_ref, bb_ref, o_ref, *,
                          depth, seq_len, block_batch):
    L = seq_len
    nb = block_batch
    nbl = nb * L

    # Hoisted within-sample lane index, reused by every tap mask (only the
    # comparison threshold changes per dilation).
    lane = lax.broadcasted_iota(jnp.int32, (1, nbl), 1) % L

    def shift_tap(x, s):
        # y[:, p] = x_sample[:, l + s] with zero padding (l = p % L).
        # Cyclic roll (XLU) + lane mask: wrapped lanes and cross-sample lanes
        # are exactly the masked ones, so the flat (C, nb*L) layout is safe.
        if s == 0:
            return x
        y = jnp.roll(x, -s, axis=-1)
        valid = (lane < (L - s)) if s > 0 else (lane >= -s)
        return jnp.where(valid, y, jnp.zeros_like(y))

    def conv3(x, w, b, d):
        # Fused im2col: one (Cout, 3C) x (3C, nb*L) bf16 matmul, f32 accum.
        # Column order of w is (tap k, channel i) -> x3 rows must match.
        x3 = jnp.concatenate([shift_tap(x, -d), x, shift_tap(x, d)], axis=0)
        acc = jnp.dot(w, x3.astype(jnp.bfloat16),
                      preferred_element_type=jnp.float32)
        return acc + b

    def instance_norm(x, eps=1e-5):
        # Per-(sample, channel) stats over L via lane-aligned static slices
        # (L % 128 == 0 -> slices are free vreg views); reductions on the XLU.
        inv_l = 1.0 / L
        pieces = []
        for b in range(nb):
            xs = x[:, b * L:(b + 1) * L]
            mean = jnp.sum(xs, axis=-1, keepdims=True) * inv_l
            var = jnp.sum(xs * xs, axis=-1, keepdims=True) * inv_l - mean * mean
            rstd = lax.rsqrt(var + eps)
            pieces.append((xs - mean) * rstd)
        return pieces[0] if nb == 1 else jnp.concatenate(pieces, axis=-1)

    def elu(x):
        # exp(x) - 1 on the (guarded) negative branch; exp goes to the EUP.
        return jnp.where(x > 0, x, jnp.exp(jnp.minimum(x, 0.0)) - 1.0)

    # Assemble the flat lane-major slab from the per-sample input block.
    if nb == 1:
        x = x_ref[0]                                     # (Cin_p, L)
    else:
        x = jnp.concatenate([x_ref[b] for b in range(nb)], axis=-1)

    out = elu(conv3(x, w0_ref[...], b0_ref[...], 1))
    # TODO(synk): switch to lax.fori_loop with dynamic wb_ref[pl.ds(i, 1)]
    # indexing if depth grows beyond ~4-8 and vreg spills appear.
    for i in range(depth):                               # static unroll
        h = instance_norm(out)
        h = conv3(h, wb_ref[i], bb_ref[i], i + 2)
        out = elu(h + out)

    # Per-sample stores: (size, L) slabs, lane width L (multiple of 128),
    # so writeback DMA of the (nb, size, L) block is contiguous in HBM.
    for b in range(nb):
        o_ref[b] = out[:, b * L:(b + 1) * L].astype(o_ref.dtype)


# --------------------------------- wrapper ----------------------------------

def _auto_block_batch(N, L):
    """Largest divisor of N keeping >= 8 grid steps (when possible) and the
    per-step lane width <= 8192."""
    target_steps = 8 if N >= 8 else max(N, 1)
    best = 1
    for nb in range(1, N + 1):
        if N % nb == 0 and (N // nb) >= target_steps and nb * L <= 8192:
            best = nb
    return best


def local_features(x, w0, b0, wbs, bbs, *, depth, block_batch=None,
                   out_dtype=jnp.float32):
    """x: (N, Cin, L); w0: (size, Cin, 3); b0: (size,);
    wbs: (depth, size, size, 3); bbs: (depth, size).  Returns (N, size, L)."""
    N, Cin, L = x.shape
    size = w0.shape[0]
    assert L % 128 == 0, "sequence length must be lane-aligned (128)"
    assert size % 8 == 0, "feature size must be sublane-aligned (8)"

    nb = _auto_block_batch(N, L) if block_batch is None else block_batch
    assert N % nb == 0, "batch must be divisible by block_batch"

    # Pad Cin to a multiple of 16 so the bf16 im2col block uses whole
    # (16, 128) bf16 tiles (zero rows contribute nothing).
    cin_p = ((Cin + 15) // 16) * 16

    x_p = jnp.pad(x.astype(jnp.float32), ((0, 0), (0, cin_p - Cin), (0, 0)))

    # im2col-fused weights: columns ordered (tap k, input channel i); bf16 MXU
    # operands.  Biases stay f32 columns.
    w0_p = jnp.pad(w0, ((0, 0), (0, cin_p - Cin), (0, 0)))
    w0_f = jnp.transpose(w0_p, (0, 2, 1)).reshape(size, 3 * cin_p)
    w0_f = w0_f.astype(jnp.bfloat16)
    wbs_f = jnp.transpose(wbs, (0, 1, 3, 2)).reshape(depth, size, 3 * size)
    wbs_f = wbs_f.astype(jnp.bfloat16)
    b0_c = b0.reshape(size, 1).astype(jnp.float32)
    bbs_c = bbs.reshape(depth, size, 1).astype(jnp.float32)

    kernel = functools.partial(local_features_kernel, depth=depth,
                               seq_len=L, block_batch=nb)

    conv_flops = 2 * N * L * size * 3 * (cin_p + depth * size)
    norm_flops = 7 * depth * N * size * L
    transcendentals = (depth + 1) * N * size * L + depth * N * size
    bytes_accessed = (x_p.size * 4
                      + N * size * L * jnp.dtype(out_dtype).itemsize
                      + (w0_f.size + wbs_f.size) * 2
                      + (b0_c.size + bbs_c.size) * 4)

    out = pl.pallas_call(
        kernel,
        out_shape=jax.ShapeDtypeStruct((N, size, L), out_dtype),
        grid_spec=pltpu.PrefetchScalarGridSpec(
            num_scalar_prefetch=0,
            grid=(N // nb,),
            in_specs=[
                pl.BlockSpec((nb, cin_p, L), lambda n: (n, 0, 0)),
                pl.BlockSpec(w0_f.shape, lambda n: (0, 0)),      # resident
                pl.BlockSpec(b0_c.shape, lambda n: (0, 0)),
                pl.BlockSpec(wbs_f.shape, lambda n: (0, 0, 0)),
                pl.BlockSpec(bbs_c.shape, lambda n: (0, 0, 0)),
            ],
            out_specs=pl.BlockSpec((nb, size, L), lambda n: (n, 0, 0)),
        ),
        compiler_params=pltpu.CompilerParams(
            dimension_semantics=("parallel",)),
        cost_estimate=pl.CostEstimate(
            flops=conv_flops + norm_flops,
            transcendentals=transcendentals,
            bytes_accessed=bytes_accessed),
    )(x_p, w0_f, b0_c, wbs_f, bbs_c)

    return out


# ------------------------- pure-JAX reference check -------------------------

def _ref_forward(x, w0, b0, wbs, bbs, depth, matmul_dtype=jnp.float32):
    """Reference; matmul_dtype=bfloat16 mimics the kernel's MXU operand
    quantization (accumulation stays f32 either way)."""
    def conv(x, w, b, d):
        N, Cin, L = x.shape
        xp = jnp.pad(x, ((0, 0), (0, 0), (d, d)))
        out = b[None, :, None].astype(jnp.float32)
        for k in range(3):
            out = out + jnp.einsum(
                'oi,nil->nol',
                w[:, :, k].astype(matmul_dtype),
                xp[:, :, k * d:k * d + L].astype(matmul_dtype),
                preferred_element_type=jnp.float32)
        return out

    def inorm(x, eps=1e-5):
        m = x.mean(axis=-1, keepdims=True)
        v = ((x - m) ** 2).mean(axis=-1, keepdims=True)
        return (x - m) / jnp.sqrt(v + eps)

    def elu(x):
        return jnp.where(x > 0, x, jnp.exp(jnp.minimum(x, 0.0)) - 1.0)

    out = elu(conv(x, w0, b0, 1))
    for i in range(depth):
        out = elu(conv(inorm(out), wbs[i], bbs[i], i + 2) + out)
    return out


# ---------------------------------- main ------------------------------------

if __name__ == "__main__":
    N, in_size, size, L, depth = 8, 4, 32, 128, 2

    key = jax.random.PRNGKey(0)
    k_x, k_w0, k_b0, k_wb, k_bb = jax.random.split(key, 5)

    x = jax.random.normal(k_x, (N, in_size, L), jnp.float32)
    # Deterministic synthetic parameters (module __init__ shapes).
    w0 = 0.3 * jax.random.normal(k_w0, (size, in_size, 3), jnp.float32)
    b0 = 0.1 * jax.random.normal(k_b0, (size,), jnp.float32)
    wbs = 0.1 * jax.random.normal(k_wb, (depth, size, size, 3), jnp.float32)
    bbs = 0.1 * jax.random.normal(k_bb, (depth, size), jnp.float32)

    out = local_features(x, w0, b0, wbs, bbs, depth=depth)
    out = jax.block_until_ready(out)
    assert out.shape == (N, size, L)

    # Tight check vs. a reference that applies the same bf16 quantization to
    # the matmul operands (isolates indexing / tap fusion / norm correctness).
    ref_q = _ref_forward(x, w0, b0, wbs, bbs, depth, matmul_dtype=jnp.bfloat16)
    err_q = float(jnp.max(jnp.abs(out - ref_q)))
    assert jnp.allclose(out, ref_q, rtol=1e-2, atol=2e-2), err_q

    # Semantic sanity check vs. the full-f32 reference; the gap is bounded by
    # the bf16 MXU operand rounding accumulated over depth+1 conv layers.
    ref = _ref_forward(x, w0, b0, wbs, bbs, depth)
    err = float(jnp.max(jnp.abs(out - ref)))
    assert jnp.allclose(out, ref, rtol=5e-2, atol=2e-1), err
    assert float(jnp.mean(jnp.abs(out - ref))) < 5e-2, err

    print("KERNEL_OK")
</pallas_src>

<mosaic_0001>
module attributes {stable_mosaic.version = 11 : i64} {
  func.func @local_features_kernel(%arg0: i32, %arg1: memref<1x16x128xf32, #tpu.memory_space<vmem>>, %arg2: memref<32x48xbf16, #tpu.memory_space<vmem>>, %arg3: memref<32x1xf32, #tpu.memory_space<vmem>>, %arg4: memref<2x32x96xbf16, #tpu.memory_space<vmem>>, %arg5: memref<2x32x1xf32, #tpu.memory_space<vmem>>, %arg6: memref<1x32x128xf32, #tpu.memory_space<vmem>>) attributes {dimension_semantics = [#tpu.dimension_semantics<parallel>], iteration_bounds = array<i64: 8>, scalar_prefetch = 0 : i64, scratch_operands = 0 : i64, tpu.core_type = #tpu.core_type<tc>, window_params = [{transform_indices = @transform_0, window_bounds = array<i64: 1, 16, 128>}, {pipeline_mode = #tpu.pipeline_mode<synchronous>, transform_indices = @transform_1, window_bounds = array<i64: 32, 48>}, {pipeline_mode = #tpu.pipeline_mode<synchronous>, transform_indices = @transform_2, window_bounds = array<i64: 32, 1>}, {pipeline_mode = #tpu.pipeline_mode<synchronous>, transform_indices = @transform_3, window_bounds = array<i64: 2, 32, 96>}, {pipeline_mode = #tpu.pipeline_mode<synchronous>, transform_indices = @transform_4, window_bounds = array<i64: 2, 32, 1>}, {transform_indices = @transform_5, window_bounds = array<i64: 1, 32, 128>}]} {
    %0 = tpu.iota {dimensions = array<i32: 1>} : vector<1x128xi32>
    %c128_i32 = arith.constant 128 : i32
    %c0_i32 = arith.constant 0 : i32
    %1 = arith.cmpi eq, %c128_i32, %c0_i32 : i32
    %c1_i32 = arith.constant 1 : i32
    %2 = arith.select %1, %c1_i32, %c128_i32 : i32
    %3 = vector.broadcast %2 : i32 to vector<1x128xi32>
    %4 = arith.remsi %0, %3 : vector<1x128xi32>
    %c0_i32_0 = arith.constant 0 : i32
    %5 = vector.broadcast %c0_i32_0 : i32 to vector<1x128xi32>
    %6 = arith.cmpi ne, %4, %5 : vector<1x128xi32>
    %c0_i32_1 = arith.constant 0 : i32
    %7 = vector.broadcast %c0_i32_1 : i32 to vector<1x128xi32>
    %8 = arith.cmpi slt, %4, %7 : vector<1x128xi32>
    %c0_i32_2 = arith.constant 0 : i32
    %9 = arith.cmpi slt, %2, %c0_i32_2 : i32
    %10 = vector.broadcast %9 : i1 to vector<1x128xi1>
    %11 = vector.broadcast %10 : vector<1x128xi1> to vector<1x128xi1>
    %12 = arith.xori %8, %11 : vector<1x128xi1>
    %13 = arith.andi %12, %6 : vector<1x128xi1>
    %14 = vector.broadcast %2 : i32 to vector<1x128xi32>
    %15 = arith.addi %4, %14 : vector<1x128xi32>
    %16 = arith.select %13, %15, %4 : vector<1x128xi1>, vector<1x128xi32>
    %c0 = arith.constant 0 : index
    %c0_3 = arith.constant 0 : index
    %c0_4 = arith.constant 0 : index
    %17 = vector.load %arg1[%c0, %c0_3, %c0_4] : memref<1x16x128xf32, #tpu.memory_space<vmem>>, vector<1x16x128xf32>
    %18 = vector.shape_cast %17 : vector<1x16x128xf32> to vector<16x128xf32>
    %c0_5 = arith.constant 0 : index
    %c0_6 = arith.constant 0 : index
    %19 = vector.load %arg2[%c0_5, %c0_6] : memref<32x48xbf16, #tpu.memory_space<vmem>>, vector<32x48xbf16>
    %c0_7 = arith.constant 0 : index
    %c0_8 = arith.constant 0 : index
    %20 = vector.load %arg3[%c0_7, %c0_8] : memref<32x1xf32, #tpu.memory_space<vmem>>, vector<32x1xf32>
    %21 = vector.extract_strided_slice %18 {offsets = [0, 127], sizes = [16, 1], strides = [1, 1]} : vector<16x128xf32> to vector<16x1xf32>
    %22 = vector.extract_strided_slice %18 {offsets = [0, 0], sizes = [16, 127], strides = [1, 1]} : vector<16x128xf32> to vector<16x127xf32>
    %23 = tpu.concatenate %21, %22 in 1 : vector<16x1xf32>, vector<16x127xf32> -> vector<16x128xf32>
    %c1_i32_9 = arith.constant 1 : i32
    %24 = vector.broadcast %c1_i32_9 : i32 to vector<1x128xi32>
    %25 = arith.cmpi sge, %16, %24 : vector<1x128xi32>
    %cst = arith.constant 0.000000e+00 : f32
    %26 = vector.broadcast %cst : f32 to vector<16x128xf32>
    %27 = vector.shape_cast %25 : vector<1x128xi1> to vector<1x128xi1>
    %28 = vector.broadcast %27 : vector<1x128xi1> to vector<16x128xi1>
    %29 = arith.select %28, %23, %26 : vector<16x128xi1>, vector<16x128xf32>
    %30 = vector.extract_strided_slice %18 {offsets = [0, 1], sizes = [16, 127], strides = [1, 1]} : vector<16x128xf32> to vector<16x127xf32>
    %31 = vector.extract_strided_slice %18 {offsets = [0, 0], sizes = [16, 1], strides = [1, 1]} : vector<16x128xf32> to vector<16x1xf32>
    %32 = tpu.concatenate %30, %31 in 1 : vector<16x127xf32>, vector<16x1xf32> -> vector<16x128xf32>
    %c127_i32 = arith.constant 127 : i32
    %33 = vector.broadcast %c127_i32 : i32 to vector<1x128xi32>
    %34 = arith.cmpi slt, %16, %33 : vector<1x128xi32>
    %cst_10 = arith.constant 0.000000e+00 : f32
    %35 = vector.broadcast %cst_10 : f32 to vector<16x128xf32>
    %36 = vector.shape_cast %34 : vector<1x128xi1> to vector<1x128xi1>
    %37 = vector.broadcast %36 : vector<1x128xi1> to vector<16x128xi1>
    %38 = arith.select %37, %32, %35 : vector<16x128xi1>, vector<16x128xf32>
    %39 = tpu.concatenate %29, %18, %38 in 0 : vector<16x128xf32>, vector<16x128xf32>, vector<16x128xf32> -> vector<48x128xf32>
    %40 = arith.truncf %39 : vector<48x128xf32> to vector<48x128xbf16>
    %cst_11 = arith.constant dense<0.000000e+00> : vector<32x128xf32>
    %41 = tpu.matmul %19, %40, %cst_11 {dimension_numbers = #tpu.dot_dimension_numbers<[1], [0], [0], [1], [0, 0, 1, 1], [], []>} : vector<32x48xbf16>, vector<48x128xbf16>, vector<32x128xf32> -> vector<32x128xf32>
    %42 = vector.broadcast %20 : vector<32x1xf32> to vector<32x128xf32>
    %43 = arith.addf %41, %42 : vector<32x128xf32>
    %cst_12 = arith.constant 0.000000e+00 : f32
    %44 = vector.broadcast %cst_12 : f32 to vector<32x128xf32>
    %45 = arith.cmpf ogt, %43, %44 : vector<32x128xf32>
    %cst_13 = arith.constant 0.000000e+00 : f32
    %46 = vector.broadcast %cst_13 : f32 to vector<32x128xf32>
    %47 = arith.minimumf %43, %46 : vector<32x128xf32>
    %48 = math.exp %47 : vector<32x128xf32>
    %cst_14 = arith.constant 1.000000e+00 : f32
    %49 = vector.broadcast %cst_14 : f32 to vector<32x128xf32>
    %50 = arith.subf %48, %49 : vector<32x128xf32>
    %51 = arith.select %45, %43, %50 : vector<32x128xi1>, vector<32x128xf32>
    %cst_15 = arith.constant dense<0.000000e+00> : vector<32xf32>
    %52 = vector.multi_reduction <add>, %51, %cst_15 [1] : vector<32x128xf32> to vector<32xf32>
    %53 = vector.shape_cast %52 : vector<32xf32> to vector<32x1xf32>
    %cst_16 = arith.constant 7.812500e-03 : f32
    %54 = vector.broadcast %cst_16 : f32 to vector<32x1xf32>
    %55 = arith.mulf %53, %54 : vector<32x1xf32>
    %56 = arith.mulf %51, %51 : vector<32x128xf32>
    %cst_17 = arith.constant dense<0.000000e+00> : vector<32xf32>
    %57 = vector.multi_reduction <add>, %56, %cst_17 [1] : vector<32x128xf32> to vector<32xf32>
    %58 = vector.shape_cast %57 : vector<32xf32> to vector<32x1xf32>
    %cst_18 = arith.constant 7.812500e-03 : f32
    %59 = vector.broadcast %cst_18 : f32 to vector<32x1xf32>
    %60 = arith.mulf %58, %59 : vector<32x1xf32>
    %61 = arith.mulf %55, %55 : vector<32x1xf32>
    %62 = arith.subf %60, %61 : vector<32x1xf32>
    %cst_19 = arith.constant 9.99999974E-6 : f32
    %63 = vector.broadcast %cst_19 : f32 to vector<32x1xf32>
    %64 = arith.addf %62, %63 : vector<32x1xf32>
    %65 = math.rsqrt %64 : vector<32x1xf32>
    %66 = vector.broadcast %55 : vector<32x1xf32> to vector<32x128xf32>
    %67 = arith.subf %51, %66 : vector<32x128xf32>
    %68 = vector.broadcast %65 : vector<32x1xf32> to vector<32x128xf32>
    %69 = arith.mulf %67, %68 : vector<32x128xf32>
    %c0_20 = arith.constant 0 : index
    %c0_21 = arith.constant 0 : index
    %c0_22 = arith.constant 0 : index
    %70 = vector.load %arg4[%c0_20, %c0_21, %c0_22] : memref<2x32x96xbf16, #tpu.memory_space<vmem>>, vector<1x32x96xbf16>
    %71 = vector.shape_cast %70 : vector<1x32x96xbf16> to vector<32x96xbf16>
    %c0_23 = arith.constant 0 : index
    %c0_24 = arith.constant 0 : index
    %c0_25 = arith.constant 0 : index
    %72 = vector.load %arg5[%c0_23, %c0_24, %c0_25] : memref<2x32x1xf32, #tpu.memory_space<vmem>>, vector<1x32x1xf32>
    %73 = vector.shape_cast %72 : vector<1x32x1xf32> to vector<32x1xf32>
    %74 = vector.extract_strided_slice %69 {offsets = [0, 126], sizes = [32, 2], strides = [1, 1]} : vector<32x128xf32> to vector<32x2xf32>
    %75 = vector.extract_strided_slice %69 {offsets = [0, 0], sizes = [32, 126], strides = [1, 1]} : vector<32x128xf32> to vector<32x126xf32>
    %76 = tpu.concatenate %74, %75 in 1 : vector<32x2xf32>, vector<32x126xf32> -> vector<32x128xf32>
    %c2_i32 = arith.constant 2 : i32
    %77 = vector.broadcast %c2_i32 : i32 to vector<1x128xi32>
    %78 = arith.cmpi sge, %16, %77 : vector<1x128xi32>
    %cst_26 = arith.constant 0.000000e+00 : f32
    %79 = vector.broadcast %cst_26 : f32 to vector<32x128xf32>
    %80 = vector.shape_cast %78 : vector<1x128xi1> to vector<1x128xi1>
    %81 = vector.broadcast %80 : vector<1x128xi1> to vector<32x128xi1>
    %82 = arith.select %81, %76, %79 : vector<32x128xi1>, vector<32x128xf32>
    %83 = vector.extract_strided_slice %69 {offsets = [0, 2], sizes = [32, 126], strides = [1, 1]} : vector<32x128xf32> to vector<32x126xf32>
    %84 = vector.extract_strided_slice %69 {offsets = [0, 0], sizes = [32, 2], strides = [1, 1]} : vector<32x128xf32> to vector<32x2xf32>
    %85 = tpu.concatenate %83, %84 in 1 : vector<32x126xf32>, vector<32x2xf32> -> vector<32x128xf32>
    %c126_i32 = arith.constant 126 : i32
    %86 = vector.broadcast %c126_i32 : i32 to vector<1x128xi32>
    %87 = arith.cmpi slt, %16, %86 : vector<1x128xi32>
    %cst_27 = arith.constant 0.000000e+00 : f32
    %88 = vector.broadcast %cst_27 : f32 to vector<32x128xf32>
    %89 = vector.shape_cast %87 : vector<1x128xi1> to vector<1x128xi1>
    %90 = vector.broadcast %89 : vector<1x128xi1> to vector<32x128xi1>
    %91 = arith.select %90, %85, %88 : vector<32x128xi1>, vector<32x128xf32>
    %92 = tpu.concatenate %82, %69, %91 in 0 : vector<32x128xf32>, vector<32x128xf32>, vector<32x128xf32> -> vector<96x128xf32>
    %93 = arith.truncf %92 : vector<96x128xf32> to vector<96x128xbf16>
    %cst_28 = arith.constant dense<0.000000e+00> : vector<32x128xf32>
    %94 = tpu.matmul %71, %93, %cst_28 {dimension_numbers = #tpu.dot_dimension_numbers<[1], [0], [0], [1], [0, 0, 1, 1], [], []>} : vector<32x96xbf16>, vector<96x128xbf16>, vector<32x128xf32> -> vector<32x128xf32>
    %95 = vector.broadcast %73 : vector<32x1xf32> to vector<32x128xf32>
    %96 = arith.addf %94, %95 : vector<32x128xf32>
    %97 = arith.addf %96, %51 : vector<32x128xf32>
    %cst_29 = arith.constant 0.000000e+00 : f32
    %98 = vector.broadcast %cst_29 : f32 to vector<32x128xf32>
    %99 = arith.cmpf ogt, %97, %98 : vector<32x128xf32>
    %cst_30 = arith.constant 0.000000e+00 : f32
    %100 = vector.broadcast %cst_30 : f32 to vector<32x128xf32>
    %101 = arith.minimumf %97, %100 : vector<32x128xf32>
    %102 = math.exp %101 : vector<32x128xf32>
    %cst_31 = arith.constant 1.000000e+00 : f32
    %103 = vector.broadcast %cst_31 : f32 to vector<32x128xf32>
    %104 = arith.subf %102, %103 : vector<32x128xf32>
    %105 = arith.select %99, %97, %104 : vector<32x128xi1>, vector<32x128xf32>
    %cst_32 = arith.constant dense<0.000000e+00> : vector<32xf32>
    %106 = vector.multi_reduction <add>, %105, %cst_32 [1] : vector<32x128xf32> to vector<32xf32>
    %107 = vector.shape_cast %106 : vector<32xf32> to vector<32x1xf32>
    %cst_33 = arith.constant 7.812500e-03 : f32
    %108 = vector.broadcast %cst_33 : f32 to vector<32x1xf32>
    %109 = arith.mulf %107, %108 : vector<32x1xf32>
    %110 = arith.mulf %105, %105 : vector<32x128xf32>
    %cst_34 = arith.constant dense<0.000000e+00> : vector<32xf32>
    %111 = vector.multi_reduction <add>, %110, %cst_34 [1] : vector<32x128xf32> to vector<32xf32>
    %112 = vector.shape_cast %111 : vector<32xf32> to vector<32x1xf32>
    %cst_35 = arith.constant 7.812500e-03 : f32
    %113 = vector.broadcast %cst_35 : f32 to vector<32x1xf32>
    %114 = arith.mulf %112, %113 : vector<32x1xf32>
    %115 = arith.mulf %109, %109 : vector<32x1xf32>
    %116 = arith.subf %114, %115 : vector<32x1xf32>
    %cst_36 = arith.constant 9.99999974E-6 : f32
    %117 = vector.broadcast %cst_36 : f32 to vector<32x1xf32>
    %118 = arith.addf %116, %117 : vector<32x1xf32>
    %119 = math.rsqrt %118 : vector<32x1xf32>
    %120 = vector.broadcast %109 : vector<32x1xf32> to vector<32x128xf32>
    %121 = arith.subf %105, %120 : vector<32x128xf32>
    %122 = vector.broadcast %119 : vector<32x1xf32> to vector<32x128xf32>
    %123 = arith.mulf %121, %122 : vector<32x128xf32>
    %c1 = arith.constant 1 : index
    %c0_37 = arith.constant 0 : index
    %c0_38 = arith.constant 0 : index
    %124 = vector.load %arg4[%c1, %c0_37, %c0_38] : memref<2x32x96xbf16, #tpu.memory_space<vmem>>, vector<1x32x96xbf16>
    %125 = vector.shape_cast %124 : vector<1x32x96xbf16> to vector<32x96xbf16>
    %c1_39 = arith.constant 1 : index
    %c0_40 = arith.constant 0 : index
    %c0_41 = arith.constant 0 : index
    %126 = vector.load %arg5[%c1_39, %c0_40, %c0_41] : memref<2x32x1xf32, #tpu.memory_space<vmem>>, vector<1x32x1xf32>
    %127 = vector.shape_cast %126 : vector<1x32x1xf32> to vector<32x1xf32>
    %128 = vector.extract_strided_slice %123 {offsets = [0, 125], sizes = [32, 3], strides = [1, 1]} : vector<32x128xf32> to vector<32x3xf32>
    %129 = vector.extract_strided_slice %123 {offsets = [0, 0], sizes = [32, 125], strides = [1, 1]} : vector<32x128xf32> to vector<32x125xf32>
    %130 = tpu.concatenate %128, %129 in 1 : vector<32x3xf32>, vector<32x125xf32> -> vector<32x128xf32>
    %c3_i32 = arith.constant 3 : i32
    %131 = vector.broadcast %c3_i32 : i32 to vector<1x128xi32>
    %132 = arith.cmpi sge, %16, %131 : vector<1x128xi32>
    %cst_42 = arith.constant 0.000000e+00 : f32
    %133 = vector.broadcast %cst_42 : f32 to vector<32x128xf32>
    %134 = vector.shape_cast %132 : vector<1x128xi1> to vector<1x128xi1>
    %135 = vector.broadcast %134 : vector<1x128xi1> to vector<32x128xi1>
    %136 = arith.select %135, %130, %133 : vector<32x128xi1>, vector<32x128xf32>
    %137 = vector.extract_strided_slice %123 {offsets = [0, 3], sizes = [32, 125], strides = [1, 1]} : vector<32x128xf32> to vector<32x125xf32>
    %138 = vector.extract_strided_slice %123 {offsets = [0, 0], sizes = [32, 3], strides = [1, 1]} : vector<32x128xf32> to vector<32x3xf32>
    %139 = tpu.concatenate %137, %138 in 1 : vector<32x125xf32>, vector<32x3xf32> -> vector<32x128xf32>
    %c125_i32 = arith.constant 125 : i32
    %140 = vector.broadcast %c125_i32 : i32 to vector<1x128xi32>
    %141 = arith.cmpi slt, %16, %140 : vector<1x128xi32>
    %cst_43 = arith.constant 0.000000e+00 : f32
    %142 = vector.broadcast %cst_43 : f32 to vector<32x128xf32>
    %143 = vector.shape_cast %141 : vector<1x128xi1> to vector<1x128xi1>
    %144 = vector.broadcast %143 : vector<1x128xi1> to vector<32x128xi1>
    %145 = arith.select %144, %139, %142 : vector<32x128xi1>, vector<32x128xf32>
    %146 = tpu.concatenate %136, %123, %145 in 0 : vector<32x128xf32>, vector<32x128xf32>, vector<32x128xf32> -> vector<96x128xf32>
    %147 = arith.truncf %146 : vector<96x128xf32> to vector<96x128xbf16>
    %cst_44 = arith.constant dense<0.000000e+00> : vector<32x128xf32>
    %148 = tpu.matmul %125, %147, %cst_44 {dimension_numbers = #tpu.dot_dimension_numbers<[1], [0], [0], [1], [0, 0, 1, 1], [], []>} : vector<32x96xbf16>, vector<96x128xbf16>, vector<32x128xf32> -> vector<32x128xf32>
    %149 = vector.broadcast %127 : vector<32x1xf32> to vector<32x128xf32>
    %150 = arith.addf %148, %149 : vector<32x128xf32>
    %151 = arith.addf %150, %105 : vector<32x128xf32>
    %cst_45 = arith.constant 0.000000e+00 : f32
    %152 = vector.broadcast %cst_45 : f32 to vector<32x128xf32>
    %153 = arith.cmpf ogt, %151, %152 : vector<32x128xf32>
    %cst_46 = arith.constant 0.000000e+00 : f32
    %154 = vector.broadcast %cst_46 : f32 to vector<32x128xf32>
    %155 = arith.minimumf %151, %154 : vector<32x128xf32>
    %156 = math.exp %155 : vector<32x128xf32>
    %cst_47 = arith.constant 1.000000e+00 : f32
    %157 = vector.broadcast %cst_47 : f32 to vector<32x128xf32>
    %158 = arith.subf %156, %157 : vector<32x128xf32>
    %159 = arith.select %153, %151, %158 : vector<32x128xi1>, vector<32x128xf32>
    %c0_48 = arith.constant 0 : index
    %c0_49 = arith.constant 0 : index
    %c0_50 = arith.constant 0 : index
    %160 = vector.load %arg6[%c0_48, %c0_49, %c0_50] : memref<1x32x128xf32, #tpu.memory_space<vmem>>, vector<1x32x128xf32>
    %161 = vector.shape_cast %160 : vector<1x32x128xf32> to vector<32x128xf32>
    %162 = vector.shape_cast %159 : vector<32x128xf32> to vector<1x32x128xf32>
    tpu.vector_store %arg6[%c0_48, %c0_49, %c0_50], %162 {strides = array<i32>} : memref<1x32x128xf32, #tpu.memory_space<vmem>>, vector<1x32x128xf32>,
    return
  }
  func.func @transform_0(%arg0: i32) -> (i32, i32, i32) {
    %c0_i32 = arith.constant 0 : i32
    %c0_i32_0 = arith.constant 0 : i32
    %c0_i32_1 = arith.constant 0 : i32
    return %arg0, %c0_i32, %c0_i32_0 : i32, i32, i32
  }
  func.func @transform_1(%arg0: i32) -> (i32, i32) {
    %c0_i32 = arith.constant 0 : i32
    %c0_i32_0 = arith.constant 0 : i32
    %c0_i32_1 = arith.constant 0 : i32
    return %c0_i32, %c0_i32_0 : i32, i32
  }
  func.func @transform_2(%arg0: i32) -> (i32, i32) {
    %c0_i32 = arith.constant 0 : i32
    %c0_i32_0 = arith.constant 0 : i32
    %c0_i32_1 = arith.constant 0 : i32
    return %c0_i32, %c0_i32_0 : i32, i32
  }
  func.func @transform_3(%arg0: i32) -> (i32, i32, i32) {
    %c0_i32 = arith.constant 0 : i32
    %c0_i32_0 = arith.constant 0 : i32
    %c0_i32_1 = arith.constant 0 : i32
    %c0_i32_2 = arith.constant 0 : i32
    return %c0_i32, %c0_i32_0, %c0_i32_1 : i32, i32, i32
  }
  func.func @transform_4(%arg0: i32) -> (i32, i32, i32) {
    %c0_i32 = arith.constant 0 : i32
    %c0_i32_0 = arith.constant 0 : i32
    %c0_i32_1 = arith.constant 0 : i32
    %c0_i32_2 = arith.constant 0 : i32
    return %c0_i32, %c0_i32_0, %c0_i32_1 : i32, i32, i32
  }
  func.func @transform_5(%arg0: i32) -> (i32, i32, i32) {
    %c0_i32 = arith.constant 0 : i32
    %c0_i32_0 = arith.constant 0 : i32
    %c0_i32_1 = arith.constant 0 : i32
    return %arg0, %c0_i32, %c0_i32_0 : i32, i32, i32
  }
}

</mosaic_0001>

<bundles_post_ra>
// kernel: tpu_custom_call.1
= control target key start
LH: loop header
LB: loop body
LE: loop exit
PB: predicated region body
PF: predicated region fallthrough
CT: control target
= control target key end

     0   :  { %10 = vsyncpa [#allocation3], 0  ;;  %s1663_s0 = inlined_call_operand.hbm [shape: f32[8,16,128], index: 0, kind: input, shape index: {}]   ;;  %s1664_s1 = inlined_call_operand.vmem [shape: bf16[32,48], index: 1, kind: input, shape index: {}]   ;;  %s1665_s2 = inlined_call_operand.vmem [shape: f32[32,1], index: 2, kind: input, shape index: {}]   ;;  %s1666_s3 = inlined_call_operand.vmem [shape: bf16[2,32,96], index: 3, kind: input, shape index: {}]   ;;  %s1667_s4 = inlined_call_operand.vmem [shape: f32[2,32,1], index: 4, kind: input, shape index: {}]   ;;  %s1668_s5 = inlined_call_operand.hbm [shape: f32[8,32,128], index: 5, kind: output, shape index: {}]  }
   0x1   :  { %12 = vsyncpa [#allocation3 + $0x1], 0 }
   0x2   :  { %13 = vsyncpa [#allocation4], 0 }
   0x3   :  { %15 = vsyncpa [#allocation4 + $0x1], 0  ;;  %s1378_s18 = smov 0   ;;  %s1380_s19 = smov 0  }
   0x4   :  { %s1382_s20 = smov 0   ;;  %s1384_s21 = smov 0  }
   0x5 LB: > { %s1399_s22 = sadd.s32 4294967295, %s1333_s21   ;;  %s941_s23 = sadd.s32 4294967294, %s1333_s21   ;;  %s1333_s21 = sphi %s1384_s21, %s1680_s21   ;;  %s1329_s20 = sphi %s1382_s20, %s1679_s20   ;;  %s1325_s19 = sphi %s1380_s19, %s1678_s19   ;;  %s1321_s18 = sphi %s1378_s18, %s1677_s18  }
   0x6   : > { %s1403_s24 = sadd.s32 1, %s1333_s21   ;;  %s28_s25 = sadd.s32 1, %s1329_s20 }
   0x7   : > { %s25_s26 = ssub.s32 %s1333_s21, %s1403_s24  ;;  %p35_p0 = scmp.ne.s32.totalorder %s1329_s20, %s1325_s19 }
   0x8   : > { %p26_p1 = scmp.eq.s32.totalorder %s25_s26, 0  ;;  %p36_p2 = scmp.eq.s32.totalorder %s1333_s21, 0 }
   0x9   : > { %p41_p3 = scmp.ne.s32.totalorder %s1325_s19, %s1321_s18  ;;  %p42_p4 = scmp.eq.s32.totalorder %s1399_s22, 0 }
   0xa   : > { %s1415_s27 = scalar_select %p26_p1, %s1329_s20, %s28_s25  }
   0xb   : > { %p1417_p5 = por %p36_p2, %p35_p0  ;;  %p1421_p6 = por %p42_p4, %p41_p3 }
   0xc   : > { %p149_p7 = scmp.eq.s32.totalorder %s1399_s22, 7  ;;  %p155_p8 = scmp.eq.s32.totalorder %s941_s23, 7 }
   0xd   : > { %p1094_p9 = scmp.lt.s32.totalorder %s1333_s21, 8  ;;  %s187_s7 = sand.u32 1, %s1329_s20  }
   0xe   : > { %p1427_p10 = por %p149_p7, %p35_p0  ;;  %p1431_p11 = por %p155_p8, %p41_p3 }
   0xf   : > { %s1017_s8 = sshll.u32 %s1333_s21, 8  ;;  %s944_s9 = sshll.u32 %s187_s7, 4 }
  0x10   : > { %s1672_s30 = scalar_select %p1427_p10, 1, 0 }
  0x11   : > { %s1673_s6 = scalar_select %p1431_p11, 1, 0 }
  0x12   : > { %s1440_s12 = scalar_lea.hbm %s1663_s0, %s1017_s8  ;;  %s191_s13 = scalar_lea.vmem [#allocation2], %s944_s9 }
  0x13   : > { %s198_s14 = sshll.u32 %s191_s13, 4  ;;  %p1444_p12 = pnand %p1094_p9, %p1417_p5  ;;  %s1448_s14 = int_to_ptr.vmem [resolvable:$true] %s198_s14 }
  0x14   : > { %s1450_s16 = scalar_lea.sflag [#allocation3], %s187_s7  ;;  %s1237_s17 = scalar_lea.hbm %s1440_s12, 256 }
  0x15   : > { %p1238_p13 = scmp.ne.s32.totalorder %s1440_s12, %s1237_s17  ;;  %p1239_p0 = pneg %p1444_p12 }
  0x16   : > { %s1242_s26 = scalar_lea.hbm %s1663_s0, 2048  ;;  %p1243_p3 = scmp.lt.u32.totalorder %s1440_s12, %s1663_s0 }
  0x17   : > { %p1240_p1 = pnand %p1239_p0, %p1238_p13  ;;  %p1244_p4 = scmp.lt.u32.totalorder %s1242_s26, %s1237_s17 }
  0x18   : > { %p1246_p7 = scmp.lt.u32.totalorder %s1237_s17, %s1440_s12 }
  0x19   : > { %p1241_p2 = pneg %p1240_p1  ;;  %p1245_p5 = por %p1244_p4, %p1243_p3 }
  0x1b   : > { %p1247_p8 = por %p1246_p7, %p1245_p5 }
  0x1d   : > { %p1248_p9 = pnand %p1247_p8, %p1241_p2 }
  0x1f   : > { %1251 = shalt.err (!%p1248_p9)
}
  0x20   : > { %s1252_s7 = scalar_lea.vmem %s1448_s14, 256  ;;  %s1335_s9 = smov [#allocation2]  }
  0x21   : > { %p1253_p13 = scmp.ne.s32.totalorder %s1448_s14, %s1252_s7  ;;  %s1257_s10 = sshll.u32 %s1335_s9, 4  ;;  %s1258_s10 = int_to_ptr.vmem [resolvable:$false] %s1257_s10 }
  0x22   : > { %s1259_s11 = scalar_lea.vmem %s1258_s10, 512  ;;  %p1260_p10 = scmp.lt.s32.totalorder %s1448_s14, %s1258_s10 }
  0x23   : > { %p1255_p1 = pnand %p1253_p13, %p1239_p0  ;;  %p1261_p3 = scmp.lt.s32.totalorder %s1259_s11, %s1252_s7 }
  0x25   : > { %p1256_p11 = pneg %p1255_p1  ;;  %p1262_p4 = por %p1261_p3, %p1260_p10 }
  0x27   : > { %p1263_p5 = pnand %p1262_p4, %p1256_p11 }
  0x29   : > { %1266 = shalt.err (!%p1263_p5)
}
  0x2a   : > { %s1336_s13 = smov 128   ;;  %s1337_s17 = smov 8  }
  0x2b   : > { %1089 = dma.hbm_to_vmem [thread:$0]  (!%p1444_p12), %s1440_s12, 256, %s1448_s14, %s1450_s16, %s1336_s13, %s1336_s13, %s1337_s17  }
  0x2c   : > { %p947_p0 = scmp.ge.s32.totalorder %s1333_s21, 1  ;;  %p206_p2 = scmp.lt.s32.totalorder %s1333_s21, 9 }
  0x2e   : > { %p207_p7 = pnand %p947_p0, %p206_p2 }
  0x2f   : > { %s1481_s23 = sand.u32 (!%p207_p7), 1, %s1325_s19  }
  0x30   : > { %210 = sbr.rel (%p207_p7) target bundleno = 1538 (0x602), region = 40  ;;  %s948_s25 = sshll.u32 (!%p207_p7), %s1481_s23, 4 }
  0x31   : > { %s213_s26 = scalar_lea.sflag (!%p207_p7), [#allocation3], %s1481_s23  ;;  %s216_s28 = scalar_lea.vmem (!%p207_p7), [#allocation2], %s948_s25 }
  0x37   : > { %1312 = dma.done.wait (%p1421_p6), %s213_s26, 256  }
  0x38   : > { %1314 = vsyncadd (%p1421_p6), %s213_s26, 4294967040  ;;  %v258_v0 = vld [vmem:[%s216_s28] sm:$0xff]  ;;  %v259_v1 = vld [vmem:[%s216_s28 + $0x8] sm:$0xff]  ;;  %s1338_s12 = smov 1   ;;  %vm325_vm0 = vcmask 392192   ;;  %s1339_s7 = smov 127   ;;  %v244_v10 = vlaneseq }
  0x39   : > { %v1139_v2 = vpack.i.bf16 %v259_v1, %v258_v0  ;;  %v293_v3 = vpack.c.bf16 %v259_v1, %v258_v0  ;;  %v1191_v4 = vld [vmem:[%s1664_s1] sm:$0xff]   ;;  %v1340_v6 = vmov 0   ;;  %v266_v7 = vld [vmem:[%s1665_s2 + $0x10] sm:$0xff]  ;;  %v265_v8 = vld [vmem:[%s1665_s2 + $0x8] sm:$0xff]  ;;  %s1341_s28 = smov 2   ;;  %vm543_vm9 = vcmask 785408  }
  0x3a   : > { %1046 = vmatprep.mubr.msk.bf16.mxu0 %vm325_vm0, %v1191_v4  ;;  %v264_v5 = vld [vmem:[%s1665_s2] sm:$0xff]  ;;  %1149 = vset.pattern.permute.xlu1 %v1340_v6  ;;  %v267_v9 = vld [vmem:[%s1665_s2 + $0x18] sm:$0xff]  ;;  %v1505_v11 = vand.u32 127, %v244_v10  ;;  %v1192_v20 = vld [vmem:[%s1664_s1 + $0x8] sm:$0xff]   ;;  %s1343_s26 = smov 3   ;;  %s949_s25 = sshll.u32 %s1481_s23, 5 }
  0x3b   : > { %1140 = vrot.lane.b32.xlu0 %v1139_v2, %s1338_s12  ;;  %297 = vperm.xlu1 %1149, %v264_v5   ;;  %s1342_s12 = smov 126   ;;  %s855_s16 = scalar_lea.sflag [#allocation4], %s1481_s23 }
  0x3c   : > { %1150 = vset.pattern.permute.xlu0 %v1340_v6  ;;  %vm276_vm1 = vcmp.ge.s32.totalorder %v1505_v11, 1  ;;  %vm287_vm3 = vcmp.lt.s32.totalorder %v1505_v11, 127  ;;  %vm481_vm10 = vcmp.ge.s32.totalorder %v1505_v11, 2  ;;  %vm500_vm12 = vcmp.lt.s32.totalorder %v1505_v11, 126  ;;  %p1675_p10 = scmp.ne.s32.totalorder %s1672_s30, 0 }
  0x3d   : > { %vm952_vm2 = vmpackc.low %vm276_vm1, %vm276_vm1 }
  0x3e   : > { %vm955_vm4 = vmpackc.low %vm287_vm3, %vm287_vm3 }
  0x3f   : > { %1145 = vrot.lane.b32.xlu0 %v1139_v2, %s1339_s7  ;;  %302 = vperm.xlu1 %1149, %v265_v8   ;;  %vm966_vm11 = vmpackc.low %vm481_vm10, %vm481_vm10  ;;  %s1345_s7 = smov [#allocation5]  }
  0x40   : > { %vm972_vm13 = vmpackc.low %vm500_vm12, %vm500_vm12  ;;  %s1271_s29 = sshll.u32 %s1345_s7, 4  ;;  %s1272_s29 = int_to_ptr.vmem [resolvable:$false] %s1271_s29 }
  0x41   : > { %s1273_s9 = scalar_lea.vmem %s1272_s29, 1024 }
  0x43   : > { %307 = vperm.xlu0 %1150, %v266_v7   ;;  %312 = vperm.xlu1 %1149, %v267_v9  }
  0xad   : > { %v1141_v12 = vpop.permute.xlu0 %1140 }
  0xae   : > { %v1143_v13 = vunpack.i.h.bf16 %v1141_v12  ;;  %v1142_v14 = vunpack.i.l.bf16 %v1141_v12 }
  0xb0   : > { %v953_v15 = vpack.c.bf16 %v1143_v13, %v1142_v14 }
  0xb1   : > { %v1146_v16 = vpop.permute.xlu0 %1145 }
  0xb2   : > { %1040 = vmatprep.subr.msk.bf16.mxu0 %vm952_vm2, %v953_v15  ;;  %v1148_v17 = vunpack.i.h.bf16 %v1146_v16  ;;  %v1147_v18 = vunpack.i.l.bf16 %v1146_v16 }
  0xb3   : > { %1041 = vmatpush3.bf16.msk.msra.mxu0 %vm952_vm2, %v953_v15  ;;  %vm705_vm2 = vcmp.ge.s32.totalorder %v1505_v11, 3 }
  0xb4   : > { %v956_v19 = vpack.c.bf16 %v1148_v17, %v1147_v18  ;;  %1042 = vmatprep.subr.bf16.mxu0 %v293_v3  ;;  %vm994_vm3 = vmpackc.low %vm705_vm2, %vm705_vm2 }
  0xb7   : > { %1043 = vmatpush3.bf16.msra.mxu0 %v293_v3 }
  0xb8   : > { %1044 = vmatprep.subr.msk.bf16.mxu0 %vm955_vm4, %v956_v19 }
  0xba   : > { %v298_v21 = vpop.permute.xlu1 %297 }
  0xbb   : > { %1045 = vmatpush3.bf16.msk.msra.mxu0 %vm955_vm4, %v956_v19  ;;  %vm724_vm4 = vcmp.lt.s32.totalorder %v1505_v11, 125 }
  0xbe   : > { %1047 = vmatmul.mubr.msk.bf16.vlgmr.msra.gmra.mrb[0].mxu0 %vm325_vm0, %v1192_v20  ;;  %v303_v22 = vpop.permute.xlu1 %302 }
  0xc2   : > { %v308_v23 = vpop.permute.xlu0 %307  ;;  %v313_v27 = vpop.permute.xlu1 %312 }
 0x191   : > { %v1048_v24 = vpop.f32.mrb[0].mxu0 }
 0x192   : > { %v375_v25 = vadd.f32 %v1048_v24, %v308_v23  ;;  %v366_v26 = vpop.f32.mrb[1].mxu0 }
 0x193   : > { %v367_v28 = vadd.f32 %v366_v26, %v298_v21  ;;  %v1049_v29 = vpop.f32.mrb[2].mxu0 }
 0x194   : > { %v387_v30 = vmin.f32 %v375_v25, 0.0  ;;  %v378_v31 = vadd.f32 %v1049_v29, %v313_v27  ;;  %v369_v32 = vpop.f32.mrb[3].mxu0  ;;  %vm383_vm5 = vcmp.gt.f32.partialorder %v375_v25, 0.0 }
 0x195   : > { %v385_v33 = vmin.f32 %v367_v28, 0.0  ;;  %v370_v34 = vadd.f32 %v369_v32, %v303_v22  ;;  %vm381_vm6 = vcmp.gt.f32.partialorder %v367_v28, 0.0 }
 0x196   : > { %v393_v35 = vmul.f32 1.442695, %v387_v30  ;;  %v388_v36 = vmin.f32 %v378_v31, 0.0  ;;  %vm384_vm8 = vcmp.gt.f32.partialorder %v378_v31, 0.0 }
 0x197   : > { %v389_v37 = vmul.f32 1.442695, %v385_v33  ;;  %v386_v38 = vmin.f32 %v370_v34, 0.0  ;;  %vm382_vm7 = vcmp.gt.f32.partialorder %v370_v34, 0.0 }
 0x198   : > { %1197 = vpow2.f32 %v393_v35  ;;  %v395_v39 = vmul.f32 1.442695, %v388_v36 }
 0x199   : > { %1199 = vpow2.f32 %v389_v37  ;;  %v391_v40 = vmul.f32 1.442695, %v386_v38  ;;  %v462_v38 = vld [vmem:[%s1667_s4 + $0x8] sm:$0xff] }
 0x19a   : > { %1201 = vpow2.f32 %v395_v39  ;;  %v464_v39 = vld [vmem:[%s1667_s4 + $0x18] sm:$0xff] }
 0x19b   : > { %1203 = vpow2.f32 %v391_v40  ;;  %v461_v40 = vld [vmem:[%s1667_s4] sm:$0xff] }
 0x1a2   : > { %v1198_v41 = vpop.eup %1197 }
 0x1a3   : > { %v1200_v42 = vpop.eup %1199  ;;  %v962_v43 = vadd.f32 -1.0, %v1198_v41  ;;  %v1193_v41 = vld [vmem:[%s1666_s3] sm:$0xff]  }
 0x1a4   : > { %v1202_v44 = vpop.eup %1201  ;;  %v960_v45 = vadd.f32 -1.0, %v1200_v42  ;;  %v463_v42 = vld [vmem:[%s1667_s4 + $0x10] sm:$0xff]  ;;  %1062 = vmatprep.mubr.msk.bf16.mxu1 %vm543_vm9, %v1193_v41 }
 0x1a5   : > { %v1204_v46 = vpop.eup %1203  ;;  %v1513_v47 = vsel %vm383_vm5, %v375_v25, %v962_v43  ;;  %v963_v50 = vadd.f32 -1.0, %v1202_v44  ;;  %vm1000_vm5 = vmpackc.low %vm724_vm4, %vm724_vm4 }
 0x1a6   : > { %409 = vadd.xlane.f32.xlu0 %v1513_v47  ;;  %v1516_v48 = vsel %vm381_vm6, %v367_v28, %v960_v45  ;;  %v961_v49 = vadd.f32 -1.0, %v1204_v46  ;;  %v419_v55 = vmul.f32 %v1513_v47, %v1513_v47 }
 0x1a7   : > { %405 = vadd.xlane.f32.xlu1 %v1516_v48  ;;  %v1522_v52 = vsel %vm384_vm8, %v378_v31, %v963_v50  ;;  %v417_v53 = vmul.f32 %v1516_v48, %v1516_v48 }
 0x1a8   : > { %v1519_v51 = vsel %vm382_vm7, %v370_v34, %v961_v49  ;;  %v420_v56 = vmul.f32 %v1522_v52, %v1522_v52 }
 0x1a9   : > { %v418_v54 = vmul.f32 %v1519_v51, %v1519_v51 }
 0x1aa   : > { %407 = vadd.xlane.f32.xlu0 %v1519_v51 }
 0x1ab   : > { %411 = vadd.xlane.f32.xlu1 %v1522_v52 }
 0x1ae   : > { %421 = vadd.xlane.f32.xlu0 %v417_v53 }
 0x1af   : > { %423 = vadd.xlane.f32.xlu1 %v418_v54 }
 0x1b2   : > { %425 = vadd.xlane.f32.xlu0 %v419_v55 }
 0x1b3   : > { %427 = vadd.xlane.f32.xlu1 %v420_v56 }
 0x233   : > { %v410_v57 = vpop.xlane.xlu0 %409 }
 0x234   : > { %v406_v58 = vpop.xlane.xlu1 %405  ;;  %v415_v0 = vmul.f32 0.0078125, %v410_v57 }
 0x235   : > { %v413_v60 = vmul.f32 0.0078125, %v406_v58 }
 0x236   : > { %v435_v10 = vmul.f32 %v415_v0, %v415_v0  ;;  %v451_v28 = vsub.f32 %v1513_v47, %v415_v0 }
 0x237   : > { %v408_v59 = vpop.xlane.xlu0 %407  ;;  %v433_v1 = vmul.f32 %v413_v60, %v413_v60  ;;  %v449_v22 = vsub.f32 %v1516_v48, %v413_v60 }
 0x238   : > { %v412_v61 = vpop.xlane.xlu1 %411  ;;  %v414_v62 = vmul.f32 0.0078125, %v408_v59 }
 0x239   : > { %v416_v5 = vmul.f32 0.0078125, %v412_v61 }
 0x23a   : > { %v434_v4 = vmul.f32 %v414_v62, %v414_v62  ;;  %v450_v24 = vsub.f32 %v1519_v51, %v414_v62 }
 0x23b   : > { %v422_v63 = vpop.xlane.xlu0 %421  ;;  %v436_v15 = vmul.f32 %v416_v5, %v416_v5  ;;  %v452_v30 = vsub.f32 %v1522_v52, %v416_v5 }
 0x23c   : > { %v429_v2 = vmul.f32 0.0078125, %v422_v63  ;;  %v424_v3 = vpop.xlane.xlu1 %423  ;;  %v1194_v63 = vld [vmem:[%s1666_s3 + $0x8] sm:$0xff]  }
 0x23d   : > { %v430_v6 = vmul.f32 0.0078125, %v424_v3 }
 0x23e   : > { %v437_v7 = vsub.f32 %v429_v2, %v433_v1 }
 0x23f   : > { %v438_v8 = vsub.f32 %v430_v6, %v434_v4  ;;  %v426_v9 = vpop.xlane.xlu0 %425 }
 0x240   : > { %v441_v12 = vadd.f32 1e-05, %v437_v7  ;;  %v431_v13 = vmul.f32 0.0078125, %v426_v9  ;;  %v428_v14 = vpop.xlane.xlu1 %427 }
 0x241   : > { %v442_v16 = vadd.f32 1e-05, %v438_v8  ;;  %v432_v17 = vmul.f32 0.0078125, %v428_v14 }
 0x242   : > { %1205 = vrsqrt.f32 %v441_v12  ;;  %v439_v18 = vsub.f32 %v431_v13, %v435_v10 }
 0x243   : > { %1207 = vrsqrt.f32 %v442_v16  ;;  %v440_v19 = vsub.f32 %v432_v17, %v436_v15 }
 0x244   : > { %v443_v20 = vadd.f32 1e-05, %v439_v18 }
 0x245   : > { %v444_v21 = vadd.f32 1e-05, %v440_v19 }
 0x246   : > { %1209 = vrsqrt.f32 %v443_v20 }
 0x247   : > { %1211 = vrsqrt.f32 %v444_v21 }
 0x24c   : > { %v1206_v23 = vpop.eup %1205 }
 0x24d   : > { %v1208_v25 = vpop.eup %1207  ;;  %v453_v26 = vmul.f32 %v1206_v23, %v449_v22 }
 0x24e   : > { %v454_v27 = vmul.f32 %v1208_v25, %v450_v24 }
 0x250   : > { %v1210_v29 = vpop.eup %1209  ;;  %v1151_v31 = vpack.i.bf16 %v454_v27, %v453_v26  ;;  %v509_v32 = vpack.c.bf16 %v454_v27, %v453_v26 }
 0x251   : > { %v1212_v33 = vpop.eup %1211  ;;  %v455_v34 = vmul.f32 %v1210_v29, %v451_v28 }
 0x252   : > { %1152 = vrot.lane.b32.xlu0 %v1151_v31, %s1341_s28  ;;  %v456_v35 = vmul.f32 %v1212_v33, %v452_v30 }
 0x254   : > { %v1166_v36 = vpack.i.bf16 %v456_v35, %v455_v34  ;;  %v510_v37 = vpack.c.bf16 %v456_v35, %v455_v34 }
 0x256   : > { %1167 = vrot.lane.b32.xlu0 %v1166_v36, %s1342_s12  ;;  %1157 = vrot.lane.b32.xlu1 %v1166_v36, %s1341_s28  ;;  %s1344_s28 = smov 125  }
 0x25a   : > { %520 = vperm.xlu0 %1150, %v462_v38   ;;  %1162 = vrot.lane.b32.xlu1 %v1151_v31, %s1342_s12  ;;  %s1018_s12 = sshll.u32 %s1399_s22, 9 }
 0x25b   : > { %s1620_s22 = scalar_lea.hbm %s1668_s5, %s1018_s12 }
 0x25e   : > { %530 = vperm.xlu0 %1150, %v464_v39   ;;  %515 = vperm.xlu1 %1149, %v461_v40  }
 0x262   : > { %525 = vperm.xlu1 %1149, %v463_v42  }
 0x2c4   : > { %v1153_v43 = vpop.permute.xlu0 %1152 }
 0x2c5   : > { %v1155_v44 = vunpack.i.h.bf16 %v1153_v43  ;;  %v1154_v45 = vunpack.i.l.bf16 %v1153_v43 }
 0x2c7   : > { %v967_v46 = vpack.c.bf16 %v1155_v44, %v1154_v45 }
 0x2c8   : > { %v1158_v49 = vpop.permute.xlu1 %1157  ;;  %v1168_v58 = vpop.permute.xlu0 %1167 }
 0x2c9   : > { %v1160_v50 = vunpack.i.h.bf16 %v1158_v49  ;;  %v1159_v53 = vunpack.i.l.bf16 %v1158_v49  ;;  %1050 = vmatprep.subr.msk.bf16.mxu1 %vm966_vm11, %v967_v46  ;;  %v1170_v59 = vunpack.i.h.bf16 %v1168_v58  ;;  %v1169_v60 = vunpack.i.l.bf16 %v1168_v58 }
 0x2ca   : > { %1051 = vmatpush3.bf16.msk.msra.mxu1 %vm966_vm11, %v967_v46 }
 0x2cb   : > { %v970_v54 = vpack.c.bf16 %v1160_v50, %v1159_v53  ;;  %v976_v62 = vpack.c.bf16 %v1170_v59, %v1169_v60 }
 0x2cc   : > { %v1163_v55 = vpop.permute.xlu1 %1162 }
 0x2cd   : > { %1052 = vmatprep.subr.msk.bf16.mxu1 %vm966_vm11, %v970_v54  ;;  %v1165_v56 = vunpack.i.h.bf16 %v1163_v55  ;;  %v1164_v57 = vunpack.i.l.bf16 %v1163_v55 }
 0x2ce   : > { %1053 = vmatpush3.bf16.msk.msra.mxu1 %vm966_vm11, %v970_v54 }
 0x2cf   : > { %1054 = vmatprep.subr.bf16.mxu1 %v509_v32  ;;  %v973_v61 = vpack.c.bf16 %v1165_v56, %v1164_v57 }
 0x2d2   : > { %1055 = vmatpush3.bf16.msra.mxu1 %v509_v32 }
 0x2d3   : > { %1056 = vmatprep.subr.bf16.mxu1 %v510_v37 }
 0x2d6   : > { %1057 = vmatpush3.bf16.msra.mxu1 %v510_v37 }
 0x2d7   : > { %1058 = vmatprep.subr.msk.bf16.mxu1 %vm972_vm13, %v973_v61 }
 0x2d9   : > { %v521_v1 = vpop.permute.xlu0 %520 }
 0x2da   : > { %1059 = vmatpush3.bf16.msk.msra.mxu1 %vm972_vm13, %v973_v61 }
 0x2db   : > { %1060 = vmatprep.subr.msk.bf16.mxu1 %vm972_vm13, %v976_v62 }
 0x2dd   : > { %v516_v0 = vpop.permute.xlu1 %515  ;;  %v531_v6 = vpop.permute.xlu0 %530 }
 0x2de   : > { %1061 = vmatpush3.bf16.msk.msra.mxu1 %vm972_vm13, %v976_v62 }
 0x2e1   : > { %1063 = vmatmul.mubr.msk.bf16.vlgmr.msra.gmra.mrb[0].mxu1 %vm543_vm9, %v1194_v63  ;;  %v526_v2 = vpop.permute.xlu1 %525 }
 0x3b4   : > { %v1064_v3 = vpop.f32.mrb[0].mxu1 }
 0x3b5   : > { %v593_v4 = vadd.f32 %v1064_v3, %v526_v2  ;;  %v584_v5 = vpop.f32.mrb[1].mxu1 }
 0x3b6   : > { %v585_v7 = vadd.f32 %v584_v5, %v516_v0  ;;  %v1065_v8 = vpop.f32.mrb[2].mxu1 }
 0x3b7   : > { %v601_v9 = vadd.f32 %v593_v4, %v1513_v47  ;;  %v596_v10 = vadd.f32 %v1065_v8, %v531_v6  ;;  %v587_v12 = vpop.f32.mrb[3].mxu1 }
 0x3b8   : > { %v599_v13 = vadd.f32 %v585_v7, %v1516_v48  ;;  %v588_v14 = vadd.f32 %v587_v12, %v521_v1 }
 0x3b9   : > { %v609_v15 = vmin.f32 %v601_v9, 0.0  ;;  %v602_v16 = vadd.f32 %v596_v10, %v1522_v52  ;;  %vm605_vm14 = vcmp.gt.f32.partialorder %v601_v9, 0.0 }
 0x3ba   : > { %v607_v17 = vmin.f32 %v599_v13, 0.0  ;;  %v600_v18 = vadd.f32 %v588_v14, %v1519_v51  ;;  %vm603_vm15 = vcmp.gt.f32.partialorder %v599_v13, 0.0 }
 0x3bb   : > { %v615_v19 = vmul.f32 1.442695, %v609_v15  ;;  %v610_v20 = vmin.f32 %v602_v16, 0.0  ;;  %vm606_vm1 = vcmp.gt.f32.partialorder %v602_v16, 0.0 }
 0x3bc   : > { %v611_v21 = vmul.f32 1.442695, %v607_v17  ;;  %v608_v22 = vmin.f32 %v600_v18, 0.0  ;;  %vm604_vm0 = vcmp.gt.f32.partialorder %v600_v18, 0.0 }
 0x3bd   : > { %1213 = vpow2.f32 %v615_v19  ;;  %v617_v23 = vmul.f32 1.442695, %v610_v20 }
 0x3be   : > { %1215 = vpow2.f32 %v611_v21  ;;  %v613_v24 = vmul.f32 1.442695, %v608_v22  ;;  %v989_v22 = vld [vmem:[%s1667_s4 + $0x28] sm:$0xff] }
 0x3bf   : > { %1217 = vpow2.f32 %v617_v23  ;;  %v991_v23 = vld [vmem:[%s1667_s4 + $0x38] sm:$0xff] }
 0x3c0   : > { %1219 = vpow2.f32 %v613_v24  ;;  %v988_v24 = vld [vmem:[%s1667_s4 + $0x20] sm:$0xff] }
 0x3c7   : > { %v1214_v47 = vpop.eup %1213 }
 0x3c8   : > { %v1216_v25 = vpop.eup %1215  ;;  %v982_v48 = vadd.f32 -1.0, %v1214_v47  ;;  %v1195_v47 = vld [vmem:[%s1666_s3 + $0x10] sm:$0xff]  }
 0x3c9   : > { %v1218_v26 = vpop.eup %1217  ;;  %v980_v27 = vadd.f32 -1.0, %v1216_v25  ;;  %v990_v25 = vld [vmem:[%s1667_s4 + $0x30] sm:$0xff]  ;;  %1078 = vmatprep.mubr.msk.bf16.mxu0 %vm543_vm9, %v1195_v47 }
 0x3ca   : > { %v1220_v52 = vpop.eup %1219  ;;  %v1563_v28 = vsel %vm605_vm14, %v601_v9, %v982_v48  ;;  %v983_v30 = vadd.f32 -1.0, %v1218_v26 }
 0x3cb   : > { %631 = vadd.xlane.f32.xlu0 %v1563_v28  ;;  %v1566_v51 = vsel %vm603_vm15, %v599_v13, %v980_v27  ;;  %v981_v29 = vadd.f32 -1.0, %v1220_v52  ;;  %v641_v35 = vmul.f32 %v1563_v28, %v1563_v28 }
 0x3cc   : > { %627 = vadd.xlane.f32.xlu1 %v1566_v51  ;;  %v1572_v32 = vsel %vm606_vm1, %v602_v16, %v983_v30  ;;  %v639_v33 = vmul.f32 %v1566_v51, %v1566_v51 }
 0x3cd   : > { %v1569_v31 = vsel %vm604_vm0, %v600_v18, %v981_v29  ;;  %v642_v36 = vmul.f32 %v1572_v32, %v1572_v32 }
 0x3ce   : > { %v640_v34 = vmul.f32 %v1569_v31, %v1569_v31 }
 0x3cf   : > { %629 = vadd.xlane.f32.xlu0 %v1569_v31 }
 0x3d0   : > { %633 = vadd.xlane.f32.xlu1 %v1572_v32 }
 0x3d3   : > { %643 = vadd.xlane.f32.xlu0 %v639_v33 }
 0x3d4   : > { %645 = vadd.xlane.f32.xlu1 %v640_v34 }
 0x3d7   : > { %647 = vadd.xlane.f32.xlu0 %v641_v35 }
 0x3d8   : > { %649 = vadd.xlane.f32.xlu1 %v642_v36 }
 0x458   : > { %v632_v37 = vpop.xlane.xlu0 %631 }
 0x459   : > { %v628_v38 = vpop.xlane.xlu1 %627  ;;  %v637_v44 = vmul.f32 0.0078125, %v632_v37 }
 0x45a   : > { %v635_v40 = vmul.f32 0.0078125, %v628_v38 }
 0x45b   : > { %v657_v58 = vmul.f32 %v637_v44, %v637_v44  ;;  %v673_v12 = vsub.f32 %v1563_v28, %v637_v44 }
 0x45c   : > { %v630_v39 = vpop.xlane.xlu0 %629  ;;  %v655_v45 = vmul.f32 %v635_v40, %v635_v40  ;;  %v671_v5 = vsub.f32 %v1566_v51, %v635_v40 }
 0x45d   : > { %v634_v41 = vpop.xlane.xlu1 %633  ;;  %v636_v42 = vmul.f32 0.0078125, %v630_v39 }
 0x45e   : > { %v638_v53 = vmul.f32 0.0078125, %v634_v41 }
 0x45f   : > { %v656_v50 = vmul.f32 %v636_v42, %v636_v42  ;;  %v672_v7 = vsub.f32 %v1569_v31, %v636_v42 }
 0x460   : > { %v644_v43 = vpop.xlane.xlu0 %643  ;;  %v658_v62 = vmul.f32 %v638_v53, %v638_v53  ;;  %v674_v14 = vsub.f32 %v1572_v32, %v638_v53 }
 0x461   : > { %v651_v46 = vmul.f32 0.0078125, %v644_v43  ;;  %v646_v49 = vpop.xlane.xlu1 %645  ;;  %v1196_v43 = vld [vmem:[%s1666_s3 + $0x18] sm:$0xff]  }
 0x462   : > { %v652_v54 = vmul.f32 0.0078125, %v646_v49 }
 0x463   : > { %v659_v55 = vsub.f32 %v651_v46, %v655_v45 }
 0x464   : > { %v660_v56 = vsub.f32 %v652_v54, %v656_v50  ;;  %v648_v57 = vpop.xlane.xlu0 %647 }
 0x465   : > { %v663_v59 = vadd.f32 1e-05, %v659_v55  ;;  %v653_v60 = vmul.f32 0.0078125, %v648_v57  ;;  %v650_v61 = vpop.xlane.xlu1 %649 }
 0x466   : > { %v664_v63 = vadd.f32 1e-05, %v660_v56  ;;  %v654_v0 = vmul.f32 0.0078125, %v650_v61 }
 0x467   : > { %1221 = vrsqrt.f32 %v663_v59  ;;  %v661_v1 = vsub.f32 %v653_v60, %v657_v58 }
 0x468   : > { %1223 = vrsqrt.f32 %v664_v63  ;;  %v662_v2 = vsub.f32 %v654_v0, %v658_v62 }
 0x469   : > { %v665_v3 = vadd.f32 1e-05, %v661_v1 }
 0x46a   : > { %v666_v4 = vadd.f32 1e-05, %v662_v2 }
 0x46b   : > { %1225 = vrsqrt.f32 %v665_v3 }
 0x46c   : > { %1227 = vrsqrt.f32 %v666_v4 }
 0x471   : > { %v1222_v6 = vpop.eup %1221 }
 0x472   : > { %v1224_v8 = vpop.eup %1223  ;;  %v675_v9 = vmul.f32 %v1222_v6, %v671_v5 }
 0x473   : > { %v676_v10 = vmul.f32 %v1224_v8, %v672_v7 }
 0x475   : > { %v1226_v13 = vpop.eup %1225  ;;  %v1171_v15 = vpack.i.bf16 %v676_v10, %v675_v9  ;;  %v733_v16 = vpack.c.bf16 %v676_v10, %v675_v9 }
 0x476   : > { %v1228_v17 = vpop.eup %1227  ;;  %v677_v18 = vmul.f32 %v1226_v13, %v673_v12 }
 0x477   : > { %1172 = vrot.lane.b32.xlu0 %v1171_v15, %s1343_s26  ;;  %v678_v19 = vmul.f32 %v1228_v17, %v674_v14 }
 0x479   : > { %v1186_v20 = vpack.i.bf16 %v678_v19, %v677_v18  ;;  %v734_v21 = vpack.c.bf16 %v678_v19, %v677_v18 }
 0x47b   : > { %1187 = vrot.lane.b32.xlu0 %v1186_v20, %s1344_s28  ;;  %1177 = vrot.lane.b32.xlu1 %v1186_v20, %s1343_s26  ;;  %s242_s26 = scalar_lea.vmem [#allocation5], %s949_s25 }
 0x47f   : > { %744 = vperm.xlu0 %1150, %v989_v22   ;;  %1182 = vrot.lane.b32.xlu1 %v1171_v15, %s1344_s28  ;;  %s868_s28 = sshll.u32 %s242_s26, 4  ;;  %s1615_s28 = int_to_ptr.vmem [resolvable:$true] %s868_s28 }
 0x480   : > { %s1267_s8 = scalar_lea.vmem %s1615_s28, 512  ;;  %p1274_p8 = scmp.lt.s32.totalorder %s1615_s28, %s1272_s29 }
 0x481   : > { %p1268_p6 = scmp.ne.s32.totalorder %s1615_s28, %s1267_s8  ;;  %p1275_p9 = scmp.lt.s32.totalorder %s1273_s9, %s1267_s8 }
 0x483   : > { %754 = vperm.xlu0 %1150, %v991_v23   ;;  %739 = vperm.xlu1 %1149, %v988_v24   ;;  %p1269_p11 = pnand %p1268_p6, %p1675_p10  ;;  %p1276_p13 = por %p1275_p9, %p1274_p8 }
 0x485   : > { %p1270_p12 = pneg %p1269_p11 }
 0x487   : > { %749 = vperm.xlu1 %1149, %v990_v25   ;;  %p1277_p1 = pnand %p1276_p13, %p1270_p12 }
 0x4e9   : > { %v1173_v48 = vpop.permute.xlu0 %1172 }
 0x4ea   : > { %v1175_v26 = vunpack.i.h.bf16 %v1173_v48  ;;  %v1174_v27 = vunpack.i.l.bf16 %v1173_v48 }
 0x4ec   : > { %v995_v52 = vpack.c.bf16 %v1175_v26, %v1174_v27 }
 0x4ed   : > { %v1178_v29 = vpop.permute.xlu1 %1177  ;;  %v1188_v38 = vpop.permute.xlu0 %1187 }
 0x4ee   : > { %v1180_v30 = vunpack.i.h.bf16 %v1178_v29  ;;  %v1179_v33 = vunpack.i.l.bf16 %v1178_v29  ;;  %1066 = vmatprep.subr.msk.bf16.mxu0 %vm994_vm3, %v995_v52  ;;  %v1190_v39 = vunpack.i.h.bf16 %v1188_v38  ;;  %v1189_v40 = vunpack.i.l.bf16 %v1188_v38 }
 0x4ef   : > { %1067 = vmatpush3.bf16.msk.msra.mxu0 %vm994_vm3, %v995_v52 }
 0x4f0   : > { %v998_v34 = vpack.c.bf16 %v1180_v30, %v1179_v33  ;;  %v1004_v42 = vpack.c.bf16 %v1190_v39, %v1189_v40 }
 0x4f1   : > { %v1183_v35 = vpop.permute.xlu1 %1182 }
 0x4f2   : > { %1068 = vmatprep.subr.msk.bf16.mxu0 %vm994_vm3, %v998_v34  ;;  %v1185_v36 = vunpack.i.h.bf16 %v1183_v35  ;;  %v1184_v37 = vunpack.i.l.bf16 %v1183_v35 }
 0x4f3   : > { %1069 = vmatpush3.bf16.msk.msra.mxu0 %vm994_vm3, %v998_v34 }
 0x4f4   : > { %1070 = vmatprep.subr.bf16.mxu0 %v733_v16  ;;  %v1001_v41 = vpack.c.bf16 %v1185_v36, %v1184_v37 }
 0x4f7   : > { %1071 = vmatpush3.bf16.msra.mxu0 %v733_v16 }
 0x4f8   : > { %1072 = vmatprep.subr.bf16.mxu0 %v734_v21 }
 0x4fb   : > { %1073 = vmatpush3.bf16.msra.mxu0 %v734_v21 }
 0x4fc   : > { %1074 = vmatprep.subr.msk.bf16.mxu0 %vm1000_vm5, %v1001_v41 }
 0x4fe   : > { %v745_v44 = vpop.permute.xlu0 %744 }
 0x4ff   : > { %1075 = vmatpush3.bf16.msk.msra.mxu0 %vm1000_vm5, %v1001_v41 }
 0x500   : > { %1076 = vmatprep.subr.msk.bf16.mxu0 %vm1000_vm5, %v1004_v42 }
 0x502   : > { %v740_v11 = vpop.permute.xlu1 %739  ;;  %v755_v53 = vpop.permute.xlu0 %754 }
 0x503   : > { %1077 = vmatpush3.bf16.msk.msra.mxu0 %vm1000_vm5, %v1004_v42 }
 0x506   : > { %1079 = vmatmul.mubr.msk.bf16.vlgmr.msra.gmra.mrb[4].mxu0 %vm543_vm9, %v1196_v43  ;;  %v750_v45 = vpop.permute.xlu1 %749 }
 0x5d9   : > { %v1080_v46 = vpop.f32.mrb[4].mxu0 }
 0x5da   : > { %v816_v49 = vadd.f32 %v1080_v46, %v750_v45  ;;  %v807_v50 = vpop.f32.mrb[5].mxu0 }
 0x5db   : > { %v808_v54 = vadd.f32 %v807_v50, %v740_v11  ;;  %v1081_v55 = vpop.f32.mrb[6].mxu0 }
 0x5dc   : > { %v824_v56 = vadd.f32 %v816_v49, %v1563_v28  ;;  %v819_v57 = vadd.f32 %v1081_v55, %v755_v53  ;;  %v810_v58 = vpop.f32.mrb[7].mxu0 }
 0x5dd   : > { %v822_v59 = vadd.f32 %v808_v54, %v1566_v51  ;;  %v811_v60 = vadd.f32 %v810_v58, %v745_v44 }
 0x5de   : > { %v832_v61 = vmin.f32 %v824_v56, 0.0  ;;  %v825_v62 = vadd.f32 %v819_v57, %v1572_v32  ;;  %vm828_vm6 = vcmp.gt.f32.partialorder %v824_v56, 0.0 }
 0x5df   : > { %v830_v63 = vmin.f32 %v822_v59, 0.0  ;;  %v823_v0 = vadd.f32 %v811_v60, %v1569_v31  ;;  %vm826_vm7 = vcmp.gt.f32.partialorder %v822_v59, 0.0 }
 0x5e0   : > { %v838_v1 = vmul.f32 1.442695, %v832_v61  ;;  %v833_v2 = vmin.f32 %v825_v62, 0.0  ;;  %vm829_vm8 = vcmp.gt.f32.partialorder %v825_v62, 0.0 }
 0x5e1   : > { %v834_v3 = vmul.f32 1.442695, %v830_v63  ;;  %v831_v4 = vmin.f32 %v823_v0, 0.0  ;;  %vm827_vm9 = vcmp.gt.f32.partialorder %v823_v0, 0.0 }
 0x5e2   : > { %1229 = vpow2.f32 %v838_v1  ;;  %v840_v5 = vmul.f32 1.442695, %v833_v2 }
 0x5e3   : > { %1231 = vpow2.f32 %v834_v3  ;;  %v836_v28 = vmul.f32 1.442695, %v831_v4 }
 0x5e4   : > { %1233 = vpow2.f32 %v840_v5 }
 0x5e5   : > { %1235 = vpow2.f32 %v836_v28 }
 0x5ec   : > { %v1230_v51 = vpop.eup %1229 }
 0x5ed   : > { %v1232_v6 = vpop.eup %1231  ;;  %v1010_v32 = vadd.f32 -1.0, %v1230_v51 }
 0x5ee   : > { %v1234_v7 = vpop.eup %1233  ;;  %v1008_v31 = vadd.f32 -1.0, %v1232_v6 }
 0x5ef   : > { %v1236_v8 = vpop.eup %1235  ;;  %v848_v9 = vsel %vm828_vm6, %v824_v56, %v1010_v32  ;;  %v1011_v10 = vadd.f32 -1.0, %v1234_v7 }
 0x5f0   : > { %852 = vst [vmem:[%s242_s26 + $0x10] sm:$0xff] %v848_v9  ;;  %v846_v12 = vsel %vm826_vm7, %v822_v59, %v1008_v31  ;;  %v1009_v13 = vadd.f32 -1.0, %v1236_v8 }
 0x5f1   : > { %850 = vst [vmem:[%s242_s26] sm:$0xff] %v846_v12  ;;  %v849_v14 = vsel %vm829_vm8, %v825_v62, %v1011_v10 }
 0x5f2   : > { %853 = vst [vmem:[%s242_s26 + $0x18] sm:$0xff] %v849_v14  ;;  %v847_v15 = vsel %vm827_vm9, %v823_v0, %v1009_v13 }
 0x5f3   : > { %851 = vst [vmem:[%s242_s26 + $0x8] sm:$0xff] %v847_v15 }
 0x5f4   : > { %1280 = shalt.err (!%p1277_p1)
}
 0x5f5   : > { %s1281_s10 = scalar_lea.hbm %s1620_s22, 512  ;;  %s1285_s17 = scalar_lea.hbm %s1668_s5, 4096 }
 0x5f6   : > { %p1282_p3 = scmp.ne.s32.totalorder %s1620_s22, %s1281_s10  ;;  %p1286_p0 = scmp.lt.u32.totalorder %s1620_s22, %s1668_s5 }
 0x5f7   : > { %p1287_p2 = scmp.lt.u32.totalorder %s1285_s17, %s1281_s10  ;;  %p1289_p6 = scmp.lt.u32.totalorder %s1281_s10, %s1620_s22 }
 0x5f8   : > { %p1283_p4 = pnand %p1282_p3, %p1675_p10 }
 0x5f9   : > { %p1288_p7 = por %p1287_p2, %p1286_p0 }
 0x5fa   : > { %p1284_p5 = pneg %p1283_p4 }
 0x5fb   : > { %p1290_p11 = por %p1289_p6, %p1288_p7 }
 0x5fd   : > { %p1291_p12 = pnand %p1290_p11, %p1284_p5 }
 0x5ff   : > { %1294 = shalt.err (!%p1291_p12)
}
 0x600   : > { %s1346_s12 = smov 128   ;;  %s1347_s14 = smov 8  }
 0x601   : > { %1084 = dma.vmem_to_hbm [thread:$0]  (%p1675_p10), %s1615_s28, 512, %s1620_s22, %s855_s16, %s1346_s12, %s1346_s12, %s1347_s14  }
 0x602 PF: > { %p1095_p8 = scmp.ge.s32.totalorder %s1333_s21, 2  ;;  %s883_s15 = sand.u32 1, %s1321_s18  }
 0x603   : > { %p1676_p9 = scmp.ne.s32.totalorder %s1673_s6, 0  ;;  %s884_s8 = scalar_lea.sflag [#allocation4], %s883_s15 }
 0x605   : > { %p1091_p13 = pnand %p1095_p8, %p1676_p9 }
 0x607   : > { %1316 = dma.done.wait (!%p1091_p13), %s884_s8, 512  }
 0x608   : > { %1318 = vsyncadd (!%p1091_p13), %s884_s8, 4294966784  ;;  %p18_p1 = scmp.ge.s32.totalorder %s1403_s24, 10   ;;  %s1677_s18 = smov %s1325_s19 }
 0x609   : > { %s1678_s19 = smov %s1329_s20  ;;  %s1679_s20 = smov %s1415_s27 }
 0x60a   : > { %s1680_s21 = smov %s1403_s24  ;;  %20 = sbr.rel (!%p18_p1) target bundleno = 5 (0x5), region = 87 }
 0x611   :  { %889 = vsyncpa [#allocation3], 1 }
 0x612   :  { %891 = vsyncpa [#allocation3 + $0x1], 1 }
 0x613   :  { %892 = vsyncpa [#allocation4], 1 }
 0x614   :  { %894 = vsyncpa [#allocation4 + $0x1], 1 }

</bundles_post_ra>
